<compile_context>
chip_gen: v6e
topology: v6e:2x2x1
jax: 0.10.0
libtpu: 0.0.40
codegen_flags: <defaults>
</compile_context>

<pallas_src>
import functools

import jax
import jax.numpy as jnp
from jax import lax
from jax.experimental import pallas as pl
from jax.experimental.pallas import tpu as pltpu


def _pick_row_tiles(H, W, min_lanes=512):
    """Largest row-tile count whose per-tile lane width is a multiple of 128
    and (preferably) >= min_lanes; falls back to fewer / no tiles."""
    for target in (min_lanes, 128):
        best = 0
        for n_r in range(1, H + 1):
            if H % n_r:
                continue
            lanes = (H // n_r) * W
            if lanes % 128 == 0 and lanes >= target:
                best = n_r
        if best:
            return best
    return 1


def _convbottleneck_kernel(x_ref, w1t_ref, b1_ref, w2t_ref, b2_ref, mask_ref,
                           o_ref, col_ref, *, H, W, c_in, n_row_tiles,
                           tile_lanes, mxu_dtype):
    """Computes one (image, row-tile) output block per grid step.

    x_ref    : (1, c_in, H*W)         NCHW-flat image (spatial on lanes)
    w1t_ref  : (c_mid, 9*c_in)        3x3 weights, column = (dy*3+dx)*c_in + ci
    b1_ref   : (c_mid, 1)
    w2t_ref  : (c_out, c_mid)         1x1 weights (channel-major)
    b2_ref   : (c_out, 1)
    mask_ref : (2, H*W)               column-boundary masks (x padding)
    o_ref    : (1, c_out, tile_lanes) NCHW-flat output row tile
    col_ref  : (9*c_in, tile_lanes)   im2col scratch already in matmul layout
    """
    HW = H * W
    r = pl.program_id(1)

    x_img = x_ref[0]                                  # (c_in, HW), f32

    # Pre-mask the columns that the 3x3 conv's x padding would zero: a dx=0
    # tap realised as a flat shift wraps dest column 0 onto the previous row's
    # last column, so zeroing source column W-1 reproduces the zero pad
    # (symmetrically column 0 for dx=2).  Row (y) padding falls out of the
    # flat-range clipping + the zero-initialized col scratch below.
    x_by_dx = (x_img * mask_ref[0:1, :],              # for dx = 0
               x_img,                                 # for dx = 1
               x_img * mask_ref[1:2, :])              # for dx = 2

    # im2col for this row tile, written directly in matmul layout:
    #   col[(dy*3+dx)*c_in + ci, p] = xpad[ci, y+dy, x+dx]   (p = local y*W+x)
    col_ref[...] = jnp.zeros_like(col_ref)            # zero padding / halo
    for rt in range(n_row_tiles):                     # static unroll; exactly
        @pl.when(r == rt)                             # one branch taken/step
        def _build(rt=rt):
            base = rt * tile_lanes
            for dy in range(3):
                for dx in range(3):
                    t = dy * 3 + dx
                    off = (dy - 1) * W + (dx - 1)
                    src_lo = max(0, base + off)
                    src_hi = min(HW, base + tile_lanes + off)
                    if src_hi <= src_lo:
                        continue
                    dst_lo = src_lo - base - off
                    dst_hi = dst_lo + (src_hi - src_lo)
                    col_ref[t * c_in:(t + 1) * c_in, dst_lo:dst_hi] = (
                        x_by_dx[dx][:, src_lo:src_hi])

    # conv1 (3x3) as one MXU matmul (bf16 operands, f32 accumulate) + bias
    # + ReLU, all channel-major with the spatial dim on lanes.
    col = col_ref[...].astype(mxu_dtype)
    h = jnp.dot(w1t_ref[...], col, preferred_element_type=jnp.float32)
    h = jnp.maximum(h + b1_ref[...], 0.0)             # (c_mid, tile_lanes) f32

    # conv2 (1x1), still channel-major -> lane-dense unmasked output stores.
    out = jnp.dot(w2t_ref[...], h.astype(mxu_dtype),
                  preferred_element_type=jnp.float32) + b2_ref[...]
    o_ref[0] = out.astype(o_ref.dtype)


def convbottleneck(x_nchw, w1, b1, w2, b2, *, row_tiles=None,
                   mxu_dtype=jnp.bfloat16):
    """x_nchw: (B, h0, H, W) f32. w1: (h0, h0, 3, 3), b1: (h0,),
    w2: (out_channels, h0, 1, 1), b2: (out_channels,).
    Returns (B, out_channels, H, W).  mxu_dtype=jnp.float32 for exact-f32
    class matmuls; bf16 (default) runs the MXU at full rate on v6e/v7x."""
    B, c_in, H, W = x_nchw.shape
    c_mid = w1.shape[0]            # first conv output channels == h0
    c_out = w2.shape[0]
    HW = H * W

    if row_tiles is None:
        row_tiles = _pick_row_tiles(H, W)
    assert H % row_tiles == 0
    tile_lanes = (H // row_tiles) * W
    assert tile_lanes == HW or tile_lanes % 128 == 0   # BlockSpec lane rule

    # NCHW consumed directly: (B, Cin, H, W) -> (B, Cin, H*W) is a free
    # minor-dim merge (no transpose / pad HBM passes in the wrapper).
    x_flat = x_nchw.reshape(B, c_in, HW)

    # PyTorch conv1 weight (Cout, Cin, 3, 3) -> (c_mid, 9*c_in) with column
    # index (dy*3+dx)*c_in + ci, matching the im2col slab order.
    w1_t = jnp.transpose(w1, (0, 2, 3, 1)).reshape(c_mid, 9 * c_in).astype(mxu_dtype)
    # PyTorch conv2 weight (Cout, Cin, 1, 1) -> (c_out, c_mid) channel-major.
    w2_t = w2.reshape(c_out, c_mid).astype(mxu_dtype)
    b1_col = b1.reshape(c_mid, 1).astype(jnp.float32)
    b2_col = b2.reshape(c_out, 1).astype(jnp.float32)

    # Column-boundary masks for the in-kernel padding (see kernel comment):
    # row 0 zeroes source column W-1 (used for dx=0 taps), row 1 zeroes
    # source column 0 (used for dx=2 taps).
    gx = jnp.arange(HW, dtype=jnp.int32) % W
    masks = jnp.stack([(gx != W - 1), (gx != 0)]).astype(jnp.float32)  # (2, HW)

    kernel = functools.partial(
        _convbottleneck_kernel, H=H, W=W, c_in=c_in, n_row_tiles=row_tiles,
        tile_lanes=tile_lanes, mxu_dtype=mxu_dtype)

    out_flat = pl.pallas_call(
        kernel,
        out_shape=jax.ShapeDtypeStruct((B, c_out, HW), x_nchw.dtype),
        grid_spec=pltpu.PrefetchScalarGridSpec(
            num_scalar_prefetch=0,
            grid=(B, row_tiles),
            in_specs=[
                # Full image per batch element; block index constant over the
                # row-tile axis -> DMA'd once per image (revisited block).
                pl.BlockSpec((1, c_in, HW), lambda b, r: (b, 0, 0)),
                pl.BlockSpec((c_mid, 9 * c_in), lambda b, r: (0, 0)),
                pl.BlockSpec((c_mid, 1), lambda b, r: (0, 0)),
                pl.BlockSpec((c_out, c_mid), lambda b, r: (0, 0)),
                pl.BlockSpec((c_out, 1), lambda b, r: (0, 0)),
                pl.BlockSpec((2, HW), lambda b, r: (0, 0)),
            ],
            out_specs=pl.BlockSpec((1, c_out, tile_lanes),
                                   lambda b, r: (b, 0, r)),
            scratch_shapes=[pltpu.VMEM((9 * c_in, tile_lanes), jnp.float32)],
        ),
        compiler_params=pltpu.CompilerParams(
            dimension_semantics=("parallel", "parallel"),
            vmem_limit_bytes=32 * 1024 * 1024,
        ),
    )(x_flat, w1_t, b1_col, w2_t, b2_col, masks)

    # (B, Cout, H*W) -> (B, Cout, H, W): free minor-dim split (no HBM pass).
    return out_flat.reshape(B, c_out, H, W)


def _reference(x, w1, b1, w2, b2):
    """Pure-JAX reference mirroring the PyTorch forward (NCHW, OIHW weights)."""
    y = lax.conv_general_dilated(
        x, w1, window_strides=(1, 1), padding=((1, 1), (1, 1)),
        dimension_numbers=("NCHW", "OIHW", "NCHW"))
    y = jnp.maximum(y + b1.reshape(1, -1, 1, 1), 0.0)
    y = lax.conv_general_dilated(
        y, w2, window_strides=(1, 1), padding=((0, 0), (0, 0)),
        dimension_numbers=("NCHW", "OIHW", "NCHW"))
    return y + b2.reshape(1, -1, 1, 1)


if __name__ == "__main__":
    # Small deterministic setup: B=2, h0=4, out_channels=8, spatial 16x16.
    B, h0, out_channels, H, W = 2, 4, 8, 16, 16

    key = jax.random.PRNGKey(0)
    kx, k1, kb1, k2, kb2 = jax.random.split(key, 5)

    x = jax.random.normal(kx, (B, h0, H, W), dtype=jnp.float32)

    # Conv2d(h0, h0, k=3)           -> weight (h0, h0, 3, 3), bias (h0,)
    w1 = 0.1 * jax.random.normal(k1, (h0, h0, 3, 3), dtype=jnp.float32)
    b1 = 0.1 * jax.random.normal(kb1, (h0,), dtype=jnp.float32)

    # Conv2d(h0, out_channels, k=1) -> weight (out_channels, h0, 1, 1), bias (out_channels,)
    w2 = 0.1 * jax.random.normal(k2, (out_channels, h0, 1, 1), dtype=jnp.float32)
    b2 = 0.1 * jax.random.normal(kb2, (out_channels,), dtype=jnp.float32)

    out = jax.block_until_ready(convbottleneck(x, w1, b1, w2, b2))
    ref = jax.block_until_ready(_reference(x, w1, b1, w2, b2))

    assert out.shape == (B, out_channels, H, W)
    max_err = jnp.max(jnp.abs(out - ref))
    # Tolerance leaves headroom for bf16 MXU operands (f32 accumulation).
    assert jnp.allclose(out, ref, atol=1e-2, rtol=1e-2), f"max abs err {max_err}"

    print("KERNEL_OK")
</pallas_src>

<mosaic_0001>
module attributes {stable_mosaic.version = 11 : i64} {
  func.func @_convbottleneck_kernel(%arg0: i32, %arg1: i32, %arg2: memref<1x4x256xf32, #tpu.memory_space<vmem>>, %arg3: memref<4x36xbf16, #tpu.memory_space<vmem>>, %arg4: memref<4x1xf32, #tpu.memory_space<vmem>>, %arg5: memref<8x4xbf16, #tpu.memory_space<vmem>>, %arg6: memref<8x1xf32, #tpu.memory_space<vmem>>, %arg7: memref<2x256xf32, #tpu.memory_space<vmem>>, %arg8: memref<1x8x128xf32, #tpu.memory_space<vmem>>, %arg9: memref<36x128xf32, #tpu.memory_space<vmem>>) attributes {dimension_semantics = [#tpu.dimension_semantics<parallel>, #tpu.dimension_semantics<parallel>], iteration_bounds = array<i64: 2, 2>, scalar_prefetch = 0 : i64, scratch_operands = 1 : i64, tpu.core_type = #tpu.core_type<tc>, window_params = [{transform_indices = @transform_0, window_bounds = array<i64: 1, 4, 256>}, {pipeline_mode = #tpu.pipeline_mode<synchronous>, transform_indices = @transform_1, window_bounds = array<i64: 4, 36>}, {pipeline_mode = #tpu.pipeline_mode<synchronous>, transform_indices = @transform_2, window_bounds = array<i64: 4, 1>}, {pipeline_mode = #tpu.pipeline_mode<synchronous>, transform_indices = @transform_3, window_bounds = array<i64: 8, 4>}, {pipeline_mode = #tpu.pipeline_mode<synchronous>, transform_indices = @transform_4, window_bounds = array<i64: 8, 1>}, {pipeline_mode = #tpu.pipeline_mode<synchronous>, transform_indices = @transform_5, window_bounds = array<i64: 2, 256>}, {transform_indices = @transform_6, window_bounds = array<i64: 1, 8, 128>}]} {
    %c0 = arith.constant 0 : index
    %c0_0 = arith.constant 0 : index
    %c0_1 = arith.constant 0 : index
    %0 = vector.load %arg2[%c0, %c0_0, %c0_1] : memref<1x4x256xf32, #tpu.memory_space<vmem>>, vector<1x4x256xf32>
    %1 = vector.shape_cast %0 : vector<1x4x256xf32> to vector<4x256xf32>
    %c0_2 = arith.constant 0 : index
    %c0_3 = arith.constant 0 : index
    %2 = vector.load %arg7[%c0_2, %c0_3] : memref<2x256xf32, #tpu.memory_space<vmem>>, vector<1x256xf32>
    %3 = vector.broadcast %2 : vector<1x256xf32> to vector<4x256xf32>
    %4 = arith.mulf %1, %3 : vector<4x256xf32>
    %c1 = arith.constant 1 : index
    %c0_4 = arith.constant 0 : index
    %5 = vector.load %arg7[%c1, %c0_4] : memref<2x256xf32, #tpu.memory_space<vmem>>, vector<1x256xf32>
    %6 = vector.broadcast %5 : vector<1x256xf32> to vector<4x256xf32>
    %7 = arith.mulf %1, %6 : vector<4x256xf32>
    %cst = arith.constant 0.000000e+00 : f32
    %8 = vector.broadcast %cst : f32 to vector<36x128xf32>
    %c0_5 = arith.constant 0 : index
    %c0_6 = arith.constant 0 : index
    %9 = vector.load %arg9[%c0_5, %c0_6] : memref<36x128xf32, #tpu.memory_space<vmem>>, vector<36x128xf32>
    tpu.vector_store %arg9[%c0_5, %c0_6], %8 {strides = array<i32>} : memref<36x128xf32, #tpu.memory_space<vmem>>, vector<36x128xf32>,
    %c0_i32 = arith.constant 0 : i32
    %10 = arith.cmpi eq, %arg1, %c0_i32 : i32
    %11 = arith.extui %10 : i1 to i32
    %c0_i32_7 = arith.constant 0 : i32
    %12 = arith.cmpi ne, %11, %c0_i32_7 : i32
    scf.if %12 {
      %34 = vector.extract_strided_slice %4 {offsets = [0, 0], sizes = [4, 111], strides = [1, 1]} : vector<4x256xf32> to vector<4x111xf32>
      %c0_25 = arith.constant 0 : index
      %c17 = arith.constant 17 : index
      %35 = vector.load %arg9[%c0_25, %c17] : memref<36x128xf32, #tpu.memory_space<vmem>>, vector<4x111xf32>
      tpu.vector_store %arg9[%c0_25, %c17], %34 {strides = array<i32>} : memref<36x128xf32, #tpu.memory_space<vmem>>, vector<4x111xf32>,
      %36 = vector.extract_strided_slice %1 {offsets = [0, 0], sizes = [4, 112], strides = [1, 1]} : vector<4x256xf32> to vector<4x112xf32>
      %c4 = arith.constant 4 : index
      %c16 = arith.constant 16 : index
      %37 = vector.load %arg9[%c4, %c16] : memref<36x128xf32, #tpu.memory_space<vmem>>, vector<4x112xf32>
      tpu.vector_store %arg9[%c4, %c16], %36 {strides = array<i32>} : memref<36x128xf32, #tpu.memory_space<vmem>>, vector<4x112xf32>,
      %38 = vector.extract_strided_slice %7 {offsets = [0, 0], sizes = [4, 113], strides = [1, 1]} : vector<4x256xf32> to vector<4x113xf32>
      %c8 = arith.constant 8 : index
      %c15 = arith.constant 15 : index
      %39 = vector.load %arg9[%c8, %c15] : memref<36x128xf32, #tpu.memory_space<vmem>>, vector<4x113xf32>
      tpu.vector_store %arg9[%c8, %c15], %38 {strides = array<i32>} : memref<36x128xf32, #tpu.memory_space<vmem>>, vector<4x113xf32>,
      %40 = vector.extract_strided_slice %4 {offsets = [0, 0], sizes = [4, 127], strides = [1, 1]} : vector<4x256xf32> to vector<4x127xf32>
      %c12 = arith.constant 12 : index
      %c1_26 = arith.constant 1 : index
      %41 = vector.load %arg9[%c12, %c1_26] : memref<36x128xf32, #tpu.memory_space<vmem>>, vector<4x127xf32>
      tpu.vector_store %arg9[%c12, %c1_26], %40 {strides = array<i32>} : memref<36x128xf32, #tpu.memory_space<vmem>>, vector<4x127xf32>,
      %42 = vector.extract_strided_slice %1 {offsets = [0, 0], sizes = [4, 128], strides = [1, 1]} : vector<4x256xf32> to vector<4x128xf32>
      %c16_27 = arith.constant 16 : index
      %c0_28 = arith.constant 0 : index
      %43 = vector.load %arg9[%c16_27, %c0_28] : memref<36x128xf32, #tpu.memory_space<vmem>>, vector<4x128xf32>
      tpu.vector_store %arg9[%c16_27, %c0_28], %42 {strides = array<i32>} : memref<36x128xf32, #tpu.memory_space<vmem>>, vector<4x128xf32>,
      %44 = vector.extract_strided_slice %7 {offsets = [0, 1], sizes = [4, 128], strides = [1, 1]} : vector<4x256xf32> to vector<4x128xf32>
      %c20 = arith.constant 20 : index
      %c0_29 = arith.constant 0 : index
      %45 = vector.load %arg9[%c20, %c0_29] : memref<36x128xf32, #tpu.memory_space<vmem>>, vector<4x128xf32>
      tpu.vector_store %arg9[%c20, %c0_29], %44 {strides = array<i32>} : memref<36x128xf32, #tpu.memory_space<vmem>>, vector<4x128xf32>,
      %46 = vector.extract_strided_slice %4 {offsets = [0, 15], sizes = [4, 128], strides = [1, 1]} : vector<4x256xf32> to vector<4x128xf32>
      %c24 = arith.constant 24 : index
      %c0_30 = arith.constant 0 : index
      %47 = vector.load %arg9[%c24, %c0_30] : memref<36x128xf32, #tpu.memory_space<vmem>>, vector<4x128xf32>
      tpu.vector_store %arg9[%c24, %c0_30], %46 {strides = array<i32>} : memref<36x128xf32, #tpu.memory_space<vmem>>, vector<4x128xf32>,
      %48 = vector.extract_strided_slice %1 {offsets = [0, 16], sizes = [4, 128], strides = [1, 1]} : vector<4x256xf32> to vector<4x128xf32>
      %c28 = arith.constant 28 : index
      %c0_31 = arith.constant 0 : index
      %49 = vector.load %arg9[%c28, %c0_31] : memref<36x128xf32, #tpu.memory_space<vmem>>, vector<4x128xf32>
      tpu.vector_store %arg9[%c28, %c0_31], %48 {strides = array<i32>} : memref<36x128xf32, #tpu.memory_space<vmem>>, vector<4x128xf32>,
      %50 = vector.extract_strided_slice %7 {offsets = [0, 17], sizes = [4, 128], strides = [1, 1]} : vector<4x256xf32> to vector<4x128xf32>
      %c32 = arith.constant 32 : index
      %c0_32 = arith.constant 0 : index
      %51 = vector.load %arg9[%c32, %c0_32] : memref<36x128xf32, #tpu.memory_space<vmem>>, vector<4x128xf32>
      tpu.vector_store %arg9[%c32, %c0_32], %50 {strides = array<i32>} : memref<36x128xf32, #tpu.memory_space<vmem>>, vector<4x128xf32>,
    } else {
    }
    %c1_i32 = arith.constant 1 : i32
    %13 = arith.cmpi eq, %arg1, %c1_i32 : i32
    %14 = arith.extui %13 : i1 to i32
    %c0_i32_8 = arith.constant 0 : i32
    %15 = arith.cmpi ne, %14, %c0_i32_8 : i32
    scf.if %15 {
      %34 = vector.extract_strided_slice %4 {offsets = [0, 111], sizes = [4, 128], strides = [1, 1]} : vector<4x256xf32> to vector<4x128xf32>
      %c0_25 = arith.constant 0 : index
      %c0_26 = arith.constant 0 : index
      %35 = vector.load %arg9[%c0_25, %c0_26] : memref<36x128xf32, #tpu.memory_space<vmem>>, vector<4x128xf32>
      tpu.vector_store %arg9[%c0_25, %c0_26], %34 {strides = array<i32>} : memref<36x128xf32, #tpu.memory_space<vmem>>, vector<4x128xf32>,
      %36 = vector.extract_strided_slice %1 {offsets = [0, 112], sizes = [4, 128], strides = [1, 1]} : vector<4x256xf32> to vector<4x128xf32>
      %c4 = arith.constant 4 : index
      %c0_27 = arith.constant 0 : index
      %37 = vector.load %arg9[%c4, %c0_27] : memref<36x128xf32, #tpu.memory_space<vmem>>, vector<4x128xf32>
      tpu.vector_store %arg9[%c4, %c0_27], %36 {strides = array<i32>} : memref<36x128xf32, #tpu.memory_space<vmem>>, vector<4x128xf32>,
      %38 = vector.extract_strided_slice %7 {offsets = [0, 113], sizes = [4, 128], strides = [1, 1]} : vector<4x256xf32> to vector<4x128xf32>
      %c8 = arith.constant 8 : index
      %c0_28 = arith.constant 0 : index
      %39 = vector.load %arg9[%c8, %c0_28] : memref<36x128xf32, #tpu.memory_space<vmem>>, vector<4x128xf32>
      tpu.vector_store %arg9[%c8, %c0_28], %38 {strides = array<i32>} : memref<36x128xf32, #tpu.memory_space<vmem>>, vector<4x128xf32>,
      %40 = vector.extract_strided_slice %4 {offsets = [0, 127], sizes = [4, 128], strides = [1, 1]} : vector<4x256xf32> to vector<4x128xf32>
      %c12 = arith.constant 12 : index
      %c0_29 = arith.constant 0 : index
      %41 = vector.load %arg9[%c12, %c0_29] : memref<36x128xf32, #tpu.memory_space<vmem>>, vector<4x128xf32>
      tpu.vector_store %arg9[%c12, %c0_29], %40 {strides = array<i32>} : memref<36x128xf32, #tpu.memory_space<vmem>>, vector<4x128xf32>,
      %42 = vector.extract_strided_slice %1 {offsets = [0, 128], sizes = [4, 128], strides = [1, 1]} : vector<4x256xf32> to vector<4x128xf32>
      %c16 = arith.constant 16 : index
      %c0_30 = arith.constant 0 : index
      %43 = vector.load %arg9[%c16, %c0_30] : memref<36x128xf32, #tpu.memory_space<vmem>>, vector<4x128xf32>
      tpu.vector_store %arg9[%c16, %c0_30], %42 {strides = array<i32>} : memref<36x128xf32, #tpu.memory_space<vmem>>, vector<4x128xf32>,
      %44 = vector.extract_strided_slice %7 {offsets = [0, 129], sizes = [4, 127], strides = [1, 1]} : vector<4x256xf32> to vector<4x127xf32>
      %c20 = arith.constant 20 : index
      %c0_31 = arith.constant 0 : index
      %45 = vector.load %arg9[%c20, %c0_31] : memref<36x128xf32, #tpu.memory_space<vmem>>, vector<4x127xf32>
      tpu.vector_store %arg9[%c20, %c0_31], %44 {strides = array<i32>} : memref<36x128xf32, #tpu.memory_space<vmem>>, vector<4x127xf32>,
      %46 = vector.extract_strided_slice %4 {offsets = [0, 143], sizes = [4, 113], strides = [1, 1]} : vector<4x256xf32> to vector<4x113xf32>
      %c24 = arith.constant 24 : index
      %c0_32 = arith.constant 0 : index
      %47 = vector.load %arg9[%c24, %c0_32] : memref<36x128xf32, #tpu.memory_space<vmem>>, vector<4x113xf32>
      tpu.vector_store %arg9[%c24, %c0_32], %46 {strides = array<i32>} : memref<36x128xf32, #tpu.memory_space<vmem>>, vector<4x113xf32>,
      %48 = vector.extract_strided_slice %1 {offsets = [0, 144], sizes = [4, 112], strides = [1, 1]} : vector<4x256xf32> to vector<4x112xf32>
      %c28 = arith.constant 28 : index
      %c0_33 = arith.constant 0 : index
      %49 = vector.load %arg9[%c28, %c0_33] : memref<36x128xf32, #tpu.memory_space<vmem>>, vector<4x112xf32>
      tpu.vector_store %arg9[%c28, %c0_33], %48 {strides = array<i32>} : memref<36x128xf32, #tpu.memory_space<vmem>>, vector<4x112xf32>,
      %50 = vector.extract_strided_slice %7 {offsets = [0, 145], sizes = [4, 111], strides = [1, 1]} : vector<4x256xf32> to vector<4x111xf32>
      %c32 = arith.constant 32 : index
      %c0_34 = arith.constant 0 : index
      %51 = vector.load %arg9[%c32, %c0_34] : memref<36x128xf32, #tpu.memory_space<vmem>>, vector<4x111xf32>
      tpu.vector_store %arg9[%c32, %c0_34], %50 {strides = array<i32>} : memref<36x128xf32, #tpu.memory_space<vmem>>, vector<4x111xf32>,
    } else {
    }
    %c0_9 = arith.constant 0 : index
    %c0_10 = arith.constant 0 : index
    %16 = vector.load %arg9[%c0_9, %c0_10] : memref<36x128xf32, #tpu.memory_space<vmem>>, vector<36x128xf32>
    %17 = arith.truncf %16 : vector<36x128xf32> to vector<36x128xbf16>
    %c0_11 = arith.constant 0 : index
    %c0_12 = arith.constant 0 : index
    %18 = vector.load %arg3[%c0_11, %c0_12] : memref<4x36xbf16, #tpu.memory_space<vmem>>, vector<4x36xbf16>
    %cst_13 = arith.constant dense<0.000000e+00> : vector<4x128xf32>
    %19 = tpu.matmul %18, %17, %cst_13 {dimension_numbers = #tpu.dot_dimension_numbers<[1], [0], [0], [1], [0, 0, 1, 1], [], []>} : vector<4x36xbf16>, vector<36x128xbf16>, vector<4x128xf32> -> vector<4x128xf32>
    %c0_14 = arith.constant 0 : index
    %c0_15 = arith.constant 0 : index
    %20 = vector.load %arg4[%c0_14, %c0_15] : memref<4x1xf32, #tpu.memory_space<vmem>>, vector<4x1xf32>
    %21 = vector.broadcast %20 : vector<4x1xf32> to vector<4x128xf32>
    %22 = arith.addf %19, %21 : vector<4x128xf32>
    %cst_16 = arith.constant 0.000000e+00 : f32
    %23 = vector.broadcast %cst_16 : f32 to vector<4x128xf32>
    %24 = arith.maximumf %22, %23 : vector<4x128xf32>
    %c0_17 = arith.constant 0 : index
    %c0_18 = arith.constant 0 : index
    %25 = vector.load %arg5[%c0_17, %c0_18] : memref<8x4xbf16, #tpu.memory_space<vmem>>, vector<8x4xbf16>
    %26 = arith.truncf %24 : vector<4x128xf32> to vector<4x128xbf16>
    %cst_19 = arith.constant dense<0.000000e+00> : vector<8x128xf32>
    %27 = tpu.matmul %25, %26, %cst_19 {dimension_numbers = #tpu.dot_dimension_numbers<[1], [0], [0], [1], [0, 0, 1, 1], [], []>} : vector<8x4xbf16>, vector<4x128xbf16>, vector<8x128xf32> -> vector<8x128xf32>
    %c0_20 = arith.constant 0 : index
    %c0_21 = arith.constant 0 : index
    %28 = vector.load %arg6[%c0_20, %c0_21] : memref<8x1xf32, #tpu.memory_space<vmem>>, vector<8x1xf32>
    %29 = vector.broadcast %28 : vector<8x1xf32> to vector<8x128xf32>
    %30 = arith.addf %27, %29 : vector<8x128xf32>
    %c0_22 = arith.constant 0 : index
    %c0_23 = arith.constant 0 : index
    %c0_24 = arith.constant 0 : index
    %31 = vector.load %arg8[%c0_22, %c0_23, %c0_24] : memref<1x8x128xf32, #tpu.memory_space<vmem>>, vector<1x8x128xf32>
    %32 = vector.shape_cast %31 : vector<1x8x128xf32> to vector<8x128xf32>
    %33 = vector.shape_cast %30 : vector<8x128xf32> to vector<1x8x128xf32>
    tpu.vector_store %arg8[%c0_22, %c0_23, %c0_24], %33 {strides = array<i32>} : memref<1x8x128xf32, #tpu.memory_space<vmem>>, vector<1x8x128xf32>,
    return
  }
  func.func @transform_0(%arg0: i32, %arg1: i32) -> (i32, i32, i32) {
    %c0_i32 = arith.constant 0 : i32
    %c0_i32_0 = arith.constant 0 : i32
    %c0_i32_1 = arith.constant 0 : i32
    return %arg0, %c0_i32, %c0_i32_0 : i32, i32, i32
  }
  func.func @transform_1(%arg0: i32, %arg1: i32) -> (i32, i32) {
    %c0_i32 = arith.constant 0 : i32
    %c0_i32_0 = arith.constant 0 : i32
    %c0_i32_1 = arith.constant 0 : i32
    return %c0_i32, %c0_i32_0 : i32, i32
  }
  func.func @transform_2(%arg0: i32, %arg1: i32) -> (i32, i32) {
    %c0_i32 = arith.constant 0 : i32
    %c0_i32_0 = arith.constant 0 : i32
    %c0_i32_1 = arith.constant 0 : i32
    return %c0_i32, %c0_i32_0 : i32, i32
  }
  func.func @transform_3(%arg0: i32, %arg1: i32) -> (i32, i32) {
    %c0_i32 = arith.constant 0 : i32
    %c0_i32_0 = arith.constant 0 : i32
    %c0_i32_1 = arith.constant 0 : i32
    return %c0_i32, %c0_i32_0 : i32, i32
  }
  func.func @transform_4(%arg0: i32, %arg1: i32) -> (i32, i32) {
    %c0_i32 = arith.constant 0 : i32
    %c0_i32_0 = arith.constant 0 : i32
    %c0_i32_1 = arith.constant 0 : i32
    return %c0_i32, %c0_i32_0 : i32, i32
  }
  func.func @transform_5(%arg0: i32, %arg1: i32) -> (i32, i32) {
    %c0_i32 = arith.constant 0 : i32
    %c0_i32_0 = arith.constant 0 : i32
    %c0_i32_1 = arith.constant 0 : i32
    return %c0_i32, %c0_i32_0 : i32, i32
  }
  func.func @transform_6(%arg0: i32, %arg1: i32) -> (i32, i32, i32) {
    %c0_i32 = arith.constant 0 : i32
    %c0_i32_0 = arith.constant 0 : i32
    return %arg0, %c0_i32, %arg1 : i32, i32, i32
  }
}

</mosaic_0001>

<bundles_post_ra>
// kernel: tpu_custom_call.1
= control target key start
LH: loop header
LB: loop body
LE: loop exit
PB: predicated region body
PF: predicated region fallthrough
CT: control target
= control target key end

     0   :  { %11 = vsyncpa [#allocation4], 0  ;;  %s1212_s0 = inlined_call_operand.vmem [shape: f32[2,4,256], index: 0, kind: input, shape index: {}]   ;;  %s1213_s1 = inlined_call_operand.hbm [shape: bf16[4,36], index: 1, kind: input, shape index: {}]   ;;  %s1214_s2 = inlined_call_operand.vmem [shape: f32[4,1], index: 2, kind: input, shape index: {}]   ;;  %s1215_s3 = inlined_call_operand.vmem [shape: bf16[8,4], index: 3, kind: input, shape index: {}]   ;;  %s1216_s4 = inlined_call_operand.vmem [shape: f32[8,1], index: 4, kind: input, shape index: {}]   ;;  %s1217_s5 = inlined_call_operand.vmem [shape: f32[2,256], index: 5, kind: input, shape index: {}]   ;;  %s1218_s6 = inlined_call_operand.hbm [shape: f32[2,8,256], index: 6, kind: output, shape index: {}]  }
   0x1   :  { %12 = vsyncpa [#allocation5], 0 }
   0x2   :  { %14 = vsyncpa [#allocation5 + $0x1], 0  ;;  %s983_s21 = smov 0   ;;  %s985_s22 = smov 0  }
   0x3   :  { %s987_s23 = smov 0   ;;  %s989_s24 = smov 0  }
   0x4   :  { %s991_s25 = smov 0   ;;  %s993_s26 = smov 0  }
   0x5   :  { %s995_s27 = smov 0   ;;  %s997_s28 = smov 0  }
   0x6 LB: > { %s658_s29 = sadd.s32 4294967295, %s925_s28   ;;  %s659_s30 = sadd.s32 4294967294, %s925_s28   ;;  %s925_s28 = sphi %s997_s28, %s20_s28   ;;  %s921_s27 = sphi %s995_s27, %s1232_s27   ;;  %s917_s26 = sphi %s993_s26, %s1231_s26   ;;  %s913_s25 = sphi %s991_s25, %s1230_s25   ;;  %s909_s24 = sphi %s989_s24, %s1229_s24   ;;  %s905_s23 = sphi %s987_s23, %s1228_s23   ;;  %s901_s22 = sphi %s985_s22, %s1227_s22   ;;  %s897_s21 = sphi %s983_s21, %s1226_s21  }
   0x7   : > { %s29_s7 = sadd.s32 1, %s917_s26  ;;  %s32_s8 = sadd.s32 1, %s921_s27 }
   0x8   : > { %p30_p0 = scmp.ge.s32.totalorder %s29_s7, 2  ;;  %s172_s9 = sadd.s32 1, %s905_s23 }
   0x9   : > { %p182_p1 = scmp.ne.s32.totalorder %s905_s23, %s901_s22  ;;  %p183_p2 = scmp.eq.s32.totalorder %s658_s29, 3 }
   0xa   : > { %s1234_s7 = smov (%p30_p0, %s29_s7), 0  ;;  %s1236_s8 = smov (!%p30_p0, %s32_s8), %s921_s27 }
   0xb   : > { %s168_s10 = ssub.s32 %s917_s26, %s1234_s7  ;;  %p1035_p3 = por %p183_p2, %p182_p1 }
   0xc   : > { %p34_p4 = scmp.ge.s32.totalorder %s1236_s8, 2  ;;  %p188_p5 = scmp.ne.s32.totalorder %s901_s22, %s897_s21 }
   0xd   : > { %p189_p6 = scmp.eq.s32.totalorder %s659_s30, 3  ;;  %p660_p7 = scmp.ge.s32.totalorder %s925_s28, 1 }
   0xe   : > { %s1238_s8 = smov (%p34_p4, %s1236_s8), 0  ;;  %p196_p9 = scmp.lt.s32.totalorder %s925_s28, 5 }
   0xf   : > { %p1044_p8 = por %p189_p6, %p188_p5  ;;  %s167_s13 = ssub.s32 %s921_s27, %s1238_s8 }
  0x10   : > { %s169_s14 = sor.u32 %s168_s10, %s167_s13  ;;  %p1051_p10 = pnand %p660_p7, %p196_p9 }
  0x11   : > { %s1221_s12 = scalar_select %p1044_p8, 1, 0 }
  0x12   : > { %p170_p11 = scmp.eq.s32.totalorder %s169_s14, 0  ;;  %p1055_p12 = scmp.eq.s32.totalorder %s658_s29, 0 }
  0x13   : > { %p707_p13 = pneg %p1051_p10  ;;  %s927_s18 = smov [#allocation3]  }
  0x14   : > { %s1062_s17 = scalar_select %p170_p11, %s905_s23, %s172_s9  }
  0x15   : > { %s209_s19 = sshll.u32 %s927_s18, 4  ;;  %p708_p0 = pnand %p1055_p12, %p707_p13  ;;  %s210_s19 = int_to_ptr.vmem [resolvable:$true] %s209_s19 }
  0x16   : > { %s814_s20 = scalar_lea.vmem %s210_s19, 32  ;;  %p822_p6 = scmp.lt.s32.totalorder %s210_s19, %s210_s19 }
  0x17   : > { %p805_p1 = pneg %p708_p0  ;;  %p815_p2 = scmp.ne.s32.totalorder %s210_s19, %s814_s20 }
  0x18   : > { %p823_p7 = scmp.lt.s32.totalorder %s814_s20, %s814_s20 }
  0x19   : > { %p817_p4 = pnand %p815_p2, %p805_p1 }
  0x1a   : > { %p824_p9 = por %p823_p7, %p822_p6 }
  0x1b   : > { %p818_p5 = pneg %p817_p4 }
  0x1d   : > { %p825_p8 = pnand %p824_p9, %p818_p5 }
  0x1f   : > { %828 = shalt.err (!%p825_p8)
}
  0x20   : > { %710 = dma.hbm_to_vmem [thread:$0]  (!%p708_p0), %s1213_s1, 32, %s210_s19, [#allocation4]  }
  0x21   : > { %242 = sbr.rel (%p1051_p10) target bundleno = 764 (0x2fc), region = 44 }
  0x26   : > { %888 = dma.done.wait (%p1055_p12), [#allocation4], 32  }
  0x27   : > { %890 = vsyncadd (%p1055_p12), [#allocation4], 4294967264  ;;  %p272_p11 = scmp.lt.s32.totalorder %s913_s25, 1  ;;  %v281_v0 = vlaneseq  ;;  %s1219_s9 = sand.u32 1, %s901_s22   ;;  %v928_v1 = vmov 0.0  }
  0x28   : > { %s1079_s10 = sshll.u32 %s1219_s9, 3  ;;  %306 = vst [vmem:[#allocation2] sm:$0xff] %v928_v1  ;;  %307 = vst [vmem:[#allocation2 + $0x8] sm:$0xff] %v928_v1  ;;  %v279_v5 = vld [vmem:[%s1217_s5] ss:$2 sm:$0x3] }
  0x29   : > { %308 = vst [vmem:[#allocation2 + $0x10] sm:$0xff] %v928_v1  ;;  %309 = vst [vmem:[#allocation2 + $0x18] sm:$0xff] %v928_v1  ;;  %s273_s13 = scalar_select %p272_p11, %s913_s25, 1  ;;  %v282_v2 = vshrl.u32 %v281_v0, 7 }
  0x2a   : > { %310 = vst [vmem:[#allocation2 + $0x20] sm:$0xf] %v928_v1  ;;  %v668_v8 = vld [vmem:[%s1217_s5 + $0x1] ss:$2 sm:$0x3]  ;;  %p669_p8 = scmp.ne.s32.totalorder %s909_s24, 0 }
  0x2b   : > { %s678_s14 = sshll.u32 %s273_s13, 3  ;;  %v283_v3 = vsub.s32 0, %v282_v2  ;;  %v287_v4 = vsub.s32 1, %v282_v2  ;;  %s271_s13 = scalar_lea.vmem [#allocation6], %s1079_s10 }
  0x2c   : > { %s276_s18 = scalar_lea.vmem %s1212_s0, %s678_s14  ;;  %s929_s14 = smov (!%p669_p8), 113  }
  0x2d   : > { %v284_v6 = vrot.slane %v279_v5, %v283_v3  ;;  %v288_v7 = vrot.slane %v279_v5, %v287_v4  ;;  %v1096_v9 = vld [vmem:[%s276_s18] sm:$0xff]  ;;  %v298_v10 = vrot.slane %v668_v8, %v283_v3  ;;  %v302_v11 = vrot.slane %v668_v8, %v287_v4  ;;  %314 = sbr.rel (%p669_p8) target bundleno = 188 (0xbc), region = 52  ;;  %s930_s15 = smov (!%p669_p8), 127  }
  0x2e   : > { %s931_s16 = smov (!%p669_p8), 112   ;;  %s932_s18 = smov (!%p669_p8), 111  }
  0x2f   : > { %v289_v12 = vcombine.low %v284_v6, %v288_v7  ;;  %v303_v13 = vcombine.low %v298_v10, %v302_v11  ;;  %s933_s19 = smov (!%p669_p8), 16   ;;  %s934_s20 = smov (!%p669_p8), 17  }
  0x30   : > { %s935_s29 = smov (!%p669_p8), 1   ;;  %s936_s30 = smov (!%p669_p8), 15  }
  0x31   : > { %v1099_v14 = vmul.f32 %v289_v12, %v1096_v9  ;;  %v1102_v15 = vmul.f32 %v303_v13, %v1096_v9 }
  0x32   : > { %338 = vst [vmem:[#allocation2 + $0x10] sm:$0xf] %v1096_v9  ;;  %v357_v18 = vcombine.high %v1096_v9, %v1096_v9  ;;  %vm353_vm0 = vcmask 924672   ;;  %vm344_vm1 = vcmask 1039360   ;;  %vm362_vm2 = vcmask 916480  }
  0x33   : > { %349 = vrot.lane.b32.xlu1 %v1099_v14, %s929_s14  ;;  %340 = vrot.lane.b32.xlu0 %v1102_v15, %s930_s15  ;;  %v348_v16 = vcombine.high %v1099_v14, %v1099_v14  ;;  %v339_v17 = vcombine.high %v1102_v15, %v1102_v15  ;;  %vm370_vm3 = vcmask 908288   ;;  %vm325_vm4 = vcmask 1043584  }
  0x34   : > { %vm319_vm5 = vcmask 1043592   ;;  %vm336_vm6 = vcmask 1043464   ;;  %vm331_vm7 = vcmask 1043576  }
  0x37   : > { %351 = vrot.lane.b32.xlu1 %v348_v16, %s929_s14  ;;  %342 = vrot.lane.b32.xlu0 %v339_v17, %s930_s15 }
  0x3b   : > { %360 = vrot.lane.b32.xlu1 %v357_v18, %s931_s16  ;;  %358 = vrot.lane.b32.xlu0 %v1096_v9, %s931_s16 }
  0x3f   : > { %368 = vrot.lane.b32.xlu1 %v339_v17, %s932_s18  ;;  %366 = vrot.lane.b32.xlu0 %v1102_v15, %s932_s18 }
  0x43   : > { %322 = vrot.lane.b32.xlu1 %v1096_v9, %s933_s19  ;;  %316 = vrot.lane.b32.xlu0 %v1099_v14, %s934_s20 }
  0x47   : > { %333 = vrot.lane.b32.xlu1 %v1099_v14, %s935_s29  ;;  %328 = vrot.lane.b32.xlu0 %v1102_v15, %s936_s30 }
  0xa5   : > { %v350_v19 = vpop.permute.xlu1 %349  ;;  %v341_v20 = vpop.permute.xlu0 %340 }
  0xa9   : > { %v352_v21 = vpop.permute.xlu1 %351  ;;  %v343_v22 = vpop.permute.xlu0 %342 }
  0xaa   : > { %v354_v23 = vsel %vm353_vm0, %v350_v19, %v352_v21  ;;  %v345_v24 = vsel %vm344_vm1, %v341_v20, %v343_v22 }
  0xab   : > { %356 = vst [vmem:[#allocation2 + $0x18] sm:$0xf] %v354_v23  ;;  %347 = vst [vmem:[#allocation2 + $0x14] sm:$0xf] %v345_v24 }
  0xad   : > { %v361_v25 = vpop.permute.xlu1 %360  ;;  %v359_v26 = vpop.permute.xlu0 %358 }
  0xae   : > { %v363_v27 = vsel %vm362_vm2, %v359_v26, %v361_v25 }
  0xaf   : > { %365 = vst [vmem:[#allocation2 + $0x1c] sm:$0xf] %v363_v27 }
  0xb1   : > { %v369_v28 = vpop.permute.xlu1 %368  ;;  %v367_v29 = vpop.permute.xlu0 %366 }
  0xb2   : > { %v371_v30 = vsel %vm370_vm3, %v367_v29, %v369_v28 }
  0xb3   : > { %373 = vst [vmem:[#allocation2 + $0x20] sm:$0xf] %v371_v30 }
  0xb5   : > { %v323_v31 = vpop.permute.xlu1 %322  ;;  %v317_v32 = vpop.permute.xlu0 %316 }
  0xb6   : > { %326 = vst.msk [vmem:[#allocation2 + $0x4] sm:$0xf] %vm325_vm4, %v323_v31 }
  0xb7   : > { %320 = vst.msk [vmem:[#allocation2] sm:$0xf] %vm319_vm5, %v317_v32 }
  0xb9   : > { %v334_v33 = vpop.permute.xlu1 %333  ;;  %v329_v34 = vpop.permute.xlu0 %328 }
  0xba   : > { %337 = vst.msk [vmem:[#allocation2 + $0xc] sm:$0xf] %vm336_vm6, %v334_v33 }
  0xbb   : > { %332 = vst.msk [vmem:[#allocation2 + $0x8] sm:$0xf] %vm331_vm7, %v329_v34 }
  0xbc PF: > { %p670_p10 = scmp.ne.s32.totalorder %s909_s24, 1 }
  0xbd   : > { %s937_s14 = smov (!%p670_p10), 16   ;;  %s938_s15 = smov (!%p670_p10), 17  }
  0xbe   : > { %377 = sbr.rel (%p670_p10) target bundleno = 332 (0x14c), region = 56  ;;  %s939_s16 = smov (!%p670_p10), 15  }
  0xbf   : > { %s940_s18 = smov (!%p670_p10), 1   ;;  %s941_s19 = smov (!%p670_p10), 113  }
  0xc0   : > { %s942_s20 = smov (!%p670_p10), 127   ;;  %s943_s29 = smov (!%p670_p10), 111  }
  0xc1   : > { %s944_s30 = smov (!%p670_p10), 112  }
  0xc3   : > { %v389_v35 = vcombine.high %v1096_v9, %v1096_v9  ;;  %390 = vrot.lane.b32.xlu1 %v1096_v9, %s937_s14  ;;  %380 = vrot.lane.b32.xlu0 %v1099_v14, %s938_s15  ;;  %v379_v36 = vcombine.high %v1099_v14, %v1099_v14  ;;  %v399_v37 = vcombine.high %v1102_v15, %v1102_v15  ;;  %vm394_vm8 = vcmask 130048  }
  0xc4   : > { %vm384_vm9 = vcmask 138240   ;;  %vm404_vm10 = vcmask 121856   ;;  %vm412_vm11 = vcmask 7168   ;;  %vm426_vm12 = vcmask 920576  }
  0xc5   : > { %417 = vst [vmem:[#allocation2 + $0x10] sm:$0xf] %v389_v35  ;;  %vm421_vm13 = vcmask 1035264   ;;  %vm436_vm14 = vcmask 904192   ;;  %vm431_vm15 = vcmask 912384  }
  0xc7   : > { %392 = vrot.lane.b32.xlu1 %v389_v35, %s937_s14  ;;  %382 = vrot.lane.b32.xlu0 %v379_v36, %s938_s15 }
  0xcb   : > { %402 = vrot.lane.b32.xlu1 %v399_v37, %s939_s16  ;;  %400 = vrot.lane.b32.xlu0 %v1102_v15, %s939_s16 }
  0xcf   : > { %410 = vrot.lane.b32.xlu1 %v379_v36, %s940_s18  ;;  %408 = vrot.lane.b32.xlu0 %v1099_v14, %s940_s18 }
  0xd3   : > { %423 = vrot.lane.b32.xlu1 %v379_v36, %s941_s19  ;;  %418 = vrot.lane.b32.xlu0 %v399_v37, %s942_s20 }
  0xd7   : > { %433 = vrot.lane.b32.xlu1 %v399_v37, %s943_s29  ;;  %428 = vrot.lane.b32.xlu0 %v389_v35, %s944_s30 }
 0x135   : > { %v391_v38 = vpop.permute.xlu1 %390  ;;  %v381_v39 = vpop.permute.xlu0 %380 }
 0x139   : > { %v393_v40 = vpop.permute.xlu1 %392  ;;  %v383_v41 = vpop.permute.xlu0 %382 }
 0x13a   : > { %v395_v42 = vsel %vm394_vm8, %v391_v38, %v393_v40  ;;  %v385_v43 = vsel %vm384_vm9, %v381_v39, %v383_v41 }
 0x13b   : > { %397 = vst [vmem:[#allocation2 + $0x4] sm:$0xf] %v395_v42  ;;  %387 = vst [vmem:[#allocation2] sm:$0xf] %v385_v43 }
 0x13d   : > { %v403_v44 = vpop.permute.xlu1 %402  ;;  %v401_v45 = vpop.permute.xlu0 %400 }
 0x13e   : > { %v405_v46 = vsel %vm404_vm10, %v401_v45, %v403_v44 }
 0x13f   : > { %407 = vst [vmem:[#allocation2 + $0x8] sm:$0xf] %v405_v46 }
 0x141   : > { %v411_v47 = vpop.permute.xlu1 %410  ;;  %v409_v48 = vpop.permute.xlu0 %408 }
 0x142   : > { %v413_v49 = vsel %vm412_vm11, %v409_v48, %v411_v47 }
 0x143   : > { %415 = vst [vmem:[#allocation2 + $0xc] sm:$0xf] %v413_v49 }
 0x145   : > { %v424_v50 = vpop.permute.xlu1 %423  ;;  %v419_v51 = vpop.permute.xlu0 %418 }
 0x146   : > { %427 = vst.msk [vmem:[#allocation2 + $0x18] sm:$0xf] %vm426_vm12, %v424_v50 }
 0x147   : > { %422 = vst.msk [vmem:[#allocation2 + $0x14] sm:$0xf] %vm421_vm13, %v419_v51 }
 0x149   : > { %v434_v52 = vpop.permute.xlu1 %433  ;;  %v429_v53 = vpop.permute.xlu0 %428 }
 0x14a   : > { %437 = vst.msk [vmem:[#allocation2 + $0x20] sm:$0xf] %vm436_vm14, %v434_v52 }
 0x14b   : > { %432 = vst.msk [vmem:[#allocation2 + $0x1c] sm:$0xf] %vm431_vm15, %v429_v53 }
 0x14c PF: > { %685 = vmatprep.subr.bf16.mxu0 %v928_v1  ;;  %vm457_vm0 = vcmask 1041408   ;;  %695 = vmatprep.subr.bf16.mxu1 %v928_v1  ;;  %vm945_vm1 = vmmov 0   ;;  %v946_v58 = vmov 0   ;;  %v447_v59 = vld [vmem:[%s1214_s2] sm:$0xf]  ;;  %v439_v0 = vld [vmem:[#allocation2 + $0x8] sm:$0xff] }
 0x14d   : > { %691 = vmatprep.mubr.msk.bf16.mxu0 %vm945_vm1, %v928_v1  ;;  %697 = vmatprep.mubr.msk.bf16.mxu1 %vm945_vm1, %v928_v1  ;;  %v504_v62 = vld [vmem:[%s1216_s4] sm:$0xff]  ;;  %v446_v3 = vld [vmem:[#allocation3] sm:$0x3]  ;;  %vm453_vm2 = vcmask 293888   ;;  %vm510_vm3 = vcmask 31744   ;;  %s674_s29 = sshll.u32 %s913_s25, 1 }
 0x14e   : > { %v440_v56 = vld [vmem:[#allocation2 + $0x10] sm:$0xff]  ;;  %802 = vset.pattern.permute.xlu0 %v946_v58  ;;  %v438_v63 = vld [vmem:[#allocation2] sm:$0xff]  ;;  %s570_s30 = sadd.s32 %s909_s24, %s674_s29  ;;  %s574_s15 = sshll.u32 %s271_s13, 4  ;;  %s1158_s15 = int_to_ptr.vmem [resolvable:$true] %s574_s15 }
 0x14f   : > { %450 = vperm.xlu0 %802, %v447_v59   ;;  %v443_v2 = vpack.c.bf16 %v439_v0, %v438_v63  ;;  %s675_s14 = sshll.u32 %s570_s30, 7  ;;  %s1224_s24 = sand.u32 1, %s901_s22  }
 0x150   : > { %s1156_s9 = scalar_lea.hbm %s1218_s6, %s675_s14  ;;  %s559_s25 = scalar_lea.sflag [#allocation5], %s1224_s24 }
 0x151   : > { %v442_v54 = vld [vmem:[#allocation2 + $0x20] sm:$0xf]  ;;  %s829_s19 = scalar_lea.vmem %s1158_s15, 128  ;;  %s947_s20 = smov [#allocation6]  }
 0x152   : > { %v445_v55 = vpack.c.bf16 %v442_v54, %v442_v54  ;;  %v441_v57 = vld [vmem:[#allocation2 + $0x18] sm:$0xff]  ;;  %p830_p12 = scmp.ne.s32.totalorder %s1158_s15, %s829_s19  ;;  %s833_s29 = sshll.u32 %s947_s20, 4  ;;  %s834_s29 = int_to_ptr.vmem [resolvable:$false] %s833_s29 }
 0x153   : > { %v444_v61 = vpack.c.bf16 %v441_v57, %v440_v56  ;;  %507 = vperm.xlu0 %802, %v504_v62   ;;  %s835_s30 = scalar_lea.vmem %s834_s29, 256  ;;  %p836_p1 = scmp.lt.s32.totalorder %s1158_s15, %s834_s29 }
 0x154   : > { %v459_v60 = vsel %vm457_vm0, %v445_v55, 0  ;;  %p831_p13 = pnand %p830_p12, %p1035_p3  ;;  %p837_p2 = scmp.lt.s32.totalorder %s835_s30, %s829_s19 }
 0x155   : > { %686 = vmatpush3.bf16.msra.mxu0 %v459_v60 }
 0x156   : > { %687 = vmatprep.subr.bf16.mxu0 %v928_v1  ;;  %p832_p0 = pneg %p831_p13  ;;  %p838_p4 = por %p837_p2, %p836_p1 }
 0x158   : > { %p839_p5 = pnand %p838_p4, %p832_p0 }
 0x159   : > { %688 = vmatpush3.bf16.msra.mxu0 %v444_v61 }
 0x15a   : > { %689 = vmatprep.subr.bf16.mxu0 %v928_v1  ;;  %v502_v1 = vld [vmem:[%s1215_s3] sm:$0xf] }
 0x15d   : > { %690 = vmatpush3.bf16.msra.mxu0 %v443_v2 }
 0x160   : > { %692 = vmatmul.mubr.msk.bf16.vlgmr.msra.gmra.mxu0 %vm453_vm2, %v446_v3 }
 0x1ca   : > { %v451_v4 = vpop.permute.xlu0 %450 }
 0x1ce   : > { %v508_v13 = vpop.permute.xlu0 %507 }
 0x220   : > { %v495_v5 = vpop.f32.mrf.mxu0 }
 0x221   : > { %v496_v6 = vadd.f32 %v495_v5, %v451_v4 }
 0x222   : > { %v693_v7 = vpop.f32.mrf.mxu0 }
 0x223   : > { %v501_v8 = vmax.f32 %v496_v6, 0.0 }
 0x224   : > { %v498_v9 = vpop.f32.mrf.mxu0 }
 0x225   : > { %v503_v10 = vpack.c.bf16 %v501_v8, %v501_v8 }
 0x226   : > { %v694_v11 = vpop.f32.mrf.mxu0 }
 0x227   : > { %v515_v12 = vsel %vm457_vm0, %v503_v10, 0 }
 0x228   : > { %696 = vmatpush3.bf16.msra.mxu1 %v515_v12 }
 0x22b   : > { %698 = vmatmul.mubr.msk.bf16.vlgmr.msra.gmra.mxu1 %vm510_vm3, %v502_v1 }
 0x2eb   : > { %v551_v14 = vpop.f32.mrf.mxu1 }
 0x2ec   : > { %v552_v15 = vadd.f32 %v551_v14, %v508_v13 }
 0x2ed   : > { %v699_v16 = vpop.f32.mrf.mxu1 }
 0x2ee   : > { %557 = vst [vmem:[%s271_s13] sm:$0xff] %v552_v15 }
 0x2ef   : > { %v554_v17 = vpop.f32.mrf.mxu1 }
 0x2f0   : > { %842 = shalt.err (!%p839_p5)
}
 0x2f1   : > { %s843_s10 = scalar_lea.hbm %s1156_s9, 128  ;;  %s847_s16 = scalar_lea.hbm %s1218_s6, 512 }
 0x2f2   : > { %p844_p6 = scmp.ne.s32.totalorder %s1156_s9, %s843_s10  ;;  %p848_p11 = scmp.lt.s32.totalorder %s1156_s9, %s1218_s6 }
 0x2f3   : > { %p849_p8 = scmp.lt.s32.totalorder %s847_s16, %s843_s10 }
 0x2f4   : > { %p845_p7 = pnand %p844_p6, %p1035_p3 }
 0x2f5   : > { %p850_p10 = por %p849_p8, %p848_p11 }
 0x2f6   : > { %p846_p9 = pneg %p845_p7 }
 0x2f8   : > { %p851_p12 = pnand %p850_p10, %p846_p9 }
 0x2fa   : > { %854 = shalt.err (!%p851_p12)
}
 0x2fb   : > { %705 = dma.vmem_to_hbm [thread:$0]  (%p1035_p3), %s1158_s15, 128, %s1156_s9, %s559_s25   ;;  %v700_v18 = vpop.f32.mrf.mxu1 }
 0x2fc PF: > { %p717_p13 = scmp.ge.s32.totalorder %s925_s28, 2  ;;  %s586_s19 = sand.u32 1, %s897_s21  }
 0x2fd   : > { %p1225_p0 = scmp.ne.s32.totalorder %s1221_s12, 0  ;;  %s587_s20 = scalar_lea.sflag [#allocation5], %s586_s19 }
 0x2ff   : > { %p712_p1 = pnand %p717_p13, %p1225_p0 }
 0x301   : > { %p713_p2 = pneg %p712_p1 }
 0x303   : > { %892 = dma.done.wait (%p713_p2), %s587_s20, 128  }
 0x304   : > { %894 = vsyncadd (%p713_p2), %s587_s20, 4294967168  ;;  %s20_s28 = sadd.s32 1, %s925_s28   ;;  %s1226_s21 = smov %s901_s22 }
 0x305   : > { %p17_p4 = scmp.ge.s32.totalorder %s20_s28, 6   ;;  %s1227_s22 = smov %s905_s23 }
 0x306   : > { %s1228_s23 = smov %s1062_s17  ;;  %s1229_s24 = smov %s917_s26 }
 0x307   : > { %s1230_s25 = smov %s921_s27  ;;  %s1231_s26 = smov %s1234_s7 }
 0x308   : > { %s1232_s27 = smov %s1238_s8  ;;  %19 = sbr.rel (!%p17_p4) target bundleno = 6 (0x6), region = 93 }
 0x30d   :  { %592 = vsyncpa [#allocation4], 1 }
 0x30e   :  { %594 = vsyncpa [#allocation4 + $0x1], 1 }
 0x30f   :  { %595 = vsyncpa [#allocation5], 1 }
 0x310   :  { %597 = vsyncpa [#allocation5 + $0x1], 1 }

</bundles_post_ra>
